<compile_context>
chip_gen: v5e
topology: v5e:2x2
jax: 0.10.0
libtpu: 0.0.40
codegen_flags: <defaults>
</compile_context>

<pallas_src>
import jax
import jax.numpy as jnp
from jax.experimental import pallas as pl
from jax.experimental.pallas import tpu as pltpu


# --------------------------------------------------------------------------
# helpers
# --------------------------------------------------------------------------
def _round_up(x, m):
    return ((x + m - 1) // m) * m


def _pick_lane_tile(dim_pad, max_tile):
    """Largest multiple of 128 <= max_tile that divides dim_pad (dim_pad is a
    multiple of 128, so 128 always works)."""
    t = min(max_tile, dim_pad)
    t = (t // 128) * 128
    t = max(t, 128)
    while t > 128 and dim_pad % t:
        t -= 128
    return t


def _detect_vmem_capacity():
    try:
        return int(pltpu.get_tpu_info().vmem_capacity_bytes)
    except Exception:
        return 64 << 20  # conservative: v7x per-TensorCore VMEM


def _select_tiles(m, k_pad, n_pad, x_itemsize, w_itemsize, out_itemsize, vmem_cap):
    """Per-generation tile selection under a VMEM budget.

    Budget accounts for double-buffered x / W / out tiles plus the f32
    accumulator.  Keeps W fully resident when it fits in half the budget.
    """
    pack = max(8, 32 // x_itemsize)           # 8 f32, 16 bf16, 32 int8/fp8
    budget = min(vmem_cap // 3, 40 << 20)     # ~21 MiB on v7x, 40 MiB on v5e/v6e

    w_full = k_pad * n_pad * w_itemsize
    if 2 * w_full <= budget // 2:
        # Whole weight VMEM-resident: only x streams from HBM.
        tk, tn = k_pad, n_pad
    else:
        tk = _pick_lane_tile(k_pad, 1024)
        tn = _pick_lane_tile(n_pad, 512)
        while 2 * tk * tn * w_itemsize > budget // 2 and tk > 128:
            tk = _pick_lane_tile(k_pad, tk - 128)
        while 2 * tk * tn * w_itemsize > budget // 2 and tn > 128:
            tn = _pick_lane_tile(n_pad, tn - 128)

    rem = budget - 2 * tk * tn * w_itemsize
    per_row = 2 * tk * x_itemsize + 2 * tn * out_itemsize + tn * 4  # x + out dbl-buf + acc
    tm_max = max(pack, rem // max(per_row, 1))
    tm = int(min(1024, tm_max, _round_up(m, pack)))
    tm = max(pack, (tm // pack) * pack)

    # v7x megacore: make sure the "parallel" axes yield >= 2 tiles for big M.
    if (n_pad // tn) == 1 and _round_up(m, tm) // tm == 1 and m >= 512:
        tm = max(pack, _round_up((m + 1) // 2, pack))

    return tm, tn, tk


# --------------------------------------------------------------------------
# kernels
# --------------------------------------------------------------------------
def _proj_relu_single_k_kernel(x_ref, wt_ref, b_ref, o_ref):
    # x_ref: (tm, K)  wt_ref: (K, tn)  b_ref: (1, tn) f32  o_ref: (tm, tn)
    acc = jnp.dot(x_ref[...], wt_ref[...], preferred_element_type=jnp.float32)
    o_ref[...] = jnp.maximum(acc + b_ref[...], 0.0).astype(o_ref.dtype)


def _proj_relu_multi_k_kernel(x_ref, wt_ref, b_ref, o_ref, acc_ref):
    # x_ref: (tm, tk)  wt_ref: (tk, tn)  b_ref: (1, tn) f32
    # o_ref: (tm, tn)  acc_ref: (tm, tn) f32 (persists across K steps)
    kk = pl.program_id(2)
    prod = jnp.dot(x_ref[...], wt_ref[...], preferred_element_type=jnp.float32)

    @pl.when(kk == 0)
    def _():
        acc_ref[...] = prod          # first-step direct write (no zero-init pass)

    @pl.when(kk > 0)
    def _():
        acc_ref[...] += prod

    @pl.when(kk == pl.num_programs(2) - 1)
    def _():
        o_ref[...] = jnp.maximum(acc_ref[...] + b_ref[...], 0.0).astype(o_ref.dtype)


# --------------------------------------------------------------------------
# parameter preparation (one-time, cached alongside the weights)
# --------------------------------------------------------------------------
def prepare_image_encoding_params(weight, bias, *, mxu_dtype=None):
    """Pre-transpose / pad / cast the Linear parameters once.

    weight: (D_out, D_in) torch Linear layout; bias: (D_out,).
    Returns a dict to pass to image_encoding_forward.
    """
    d_out, d_in = weight.shape
    k_pad = _round_up(d_in, 128)
    n_pad = _round_up(d_out, 128)

    wt = weight.T                                    # (D_in, D_out): canonical (K, N)
    if (k_pad != d_in) or (n_pad != d_out):
        wt = jnp.pad(wt, ((0, k_pad - d_in), (0, n_pad - d_out)))
    if mxu_dtype is not None:
        wt = wt.astype(mxu_dtype)

    b = bias
    if n_pad != d_out:
        b = jnp.pad(bias, (0, n_pad - d_out))
    b = b.reshape(1, n_pad).astype(jnp.float32)

    return {"wt": wt, "b": b, "d_in": d_in, "d_out": d_out, "mxu_dtype": mxu_dtype}


# --------------------------------------------------------------------------
# forward
# --------------------------------------------------------------------------
def image_encoding_forward(images, params, *, out_dtype=None, tiles=None):
    """relu(images @ W^T + b) with cached, pre-transposed parameters."""
    wt, b = params["wt"], params["b"]
    d_in, d_out = params["d_in"], params["d_out"]
    mxu_dtype = params["mxu_dtype"]

    orig_shape = images.shape
    assert orig_shape[-1] == d_in, "images last dim must match Linear in_features"
    x2d = images.reshape(-1, d_in)
    m = x2d.shape[0]
    k_pad, n_pad = wt.shape
    out_dtype = out_dtype if out_dtype is not None else images.dtype

    x_itemsize = jnp.dtype(mxu_dtype if mxu_dtype is not None else images.dtype).itemsize
    w_itemsize = wt.dtype.itemsize
    out_itemsize = jnp.dtype(out_dtype).itemsize
    vmem_cap = _detect_vmem_capacity()
    pack = max(8, 32 // x_itemsize)

    if tiles is None:
        tm, tn, tk = _select_tiles(m, k_pad, n_pad, x_itemsize, w_itemsize,
                                   out_itemsize, vmem_cap)
    else:
        tm, tn, tk = tiles
        tk = _pick_lane_tile(k_pad, tk)
        tn = _pick_lane_tile(n_pad, tn)
        tm = max(pack, _round_up(min(tm, _round_up(m, pack)), pack))

    m_pad = _round_up(m, tm)

    # Only x is padded/cast per call (weights/bias were prepared once).
    x_p = x2d
    if (m_pad != m) or (k_pad != d_in):
        x_p = jnp.pad(x2d, ((0, m_pad - m), (0, k_pad - d_in)))
    if mxu_dtype is not None:
        x_p = x_p.astype(mxu_dtype)

    grid = (m_pad // tm, n_pad // tn, k_pad // tk)
    k_steps = grid[2]

    cost = pl.CostEstimate(
        flops=2 * m_pad * n_pad * k_pad,
        transcendentals=0,
        bytes_accessed=int(x_p.size * x_p.dtype.itemsize
                           + wt.size * w_itemsize
                           + b.size * b.dtype.itemsize
                           + m_pad * n_pad * out_itemsize),
    )

    # Working-set estimate (double-buffered inputs/outputs + f32 accumulator).
    workset = (2 * tm * tk * x_itemsize + 2 * tk * tn * w_itemsize
               + 2 * tm * tn * out_itemsize + tm * tn * 4 + 2 * tn * 4)
    vmem_limit = int(min(max(32 << 20, workset + (8 << 20)), vmem_cap - (8 << 20)))

    in_specs = [
        pl.BlockSpec((tm, tk), lambda i, j, kk: (i, kk)),   # x row tile
        pl.BlockSpec((tk, tn), lambda i, j, kk: (kk, j)),   # W^T slab (canonical K,N)
        pl.BlockSpec((1, tn), lambda i, j, kk: (0, j)),     # bias slab (f32)
    ]
    out_spec = pl.BlockSpec((tm, tn), lambda i, j, kk: (i, j))
    compiler_params = pltpu.CompilerParams(
        dimension_semantics=("parallel", "parallel", "arbitrary"),
        vmem_limit_bytes=vmem_limit,
    )

    if k_steps == 1:
        kernel = _proj_relu_single_k_kernel
        scratch = []
    else:
        kernel = _proj_relu_multi_k_kernel
        scratch = [pltpu.VMEM((tm, tn), jnp.float32)]

    out_p = pl.pallas_call(
        kernel,
        out_shape=jax.ShapeDtypeStruct((m_pad, n_pad), out_dtype),
        grid_spec=pltpu.PrefetchScalarGridSpec(
            num_scalar_prefetch=0,
            grid=grid,
            in_specs=in_specs,
            out_specs=out_spec,
            scratch_shapes=scratch,
        ),
        compiler_params=compiler_params,
        cost_estimate=cost,
    )(x_p, wt, b)

    out2d = out_p[:m, :d_out]
    return out2d.reshape(*orig_shape[:-1], d_out)


def _reference(images, weight, bias):
    return jnp.maximum(jnp.einsum("...i,oi->...o", images, weight) + bias, 0.0)


# --------------------------------------------------------------------------
# demo / self-test
# --------------------------------------------------------------------------
if __name__ == "__main__":
    # --- toy shape matching the module (opt.visual_feat_dim == D) ---
    B, N, D = 2, 8, 32
    key = jax.random.PRNGKey(0)
    k_img, k_w, k_b = jax.random.split(key, 3)

    images = jax.random.normal(k_img, (B, N, D), dtype=jnp.float32)
    weight = jax.random.normal(k_w, (D, D), dtype=jnp.float32) * (1.0 / jnp.sqrt(D))
    bias = jax.random.normal(k_b, (D,), dtype=jnp.float32) * 0.01

    ref = _reference(images, weight, bias)

    # Exact f32 path (same semantics as the PyTorch module).
    params_f32 = prepare_image_encoding_params(weight, bias)
    out = jax.block_until_ready(image_encoding_forward(images, params_f32))
    assert out.shape == (B, N, D)
    assert jnp.allclose(out, ref, atol=1e-5, rtol=1e-5), "f32 mismatch vs reference"

    # bf16-MXU / f32-accumulate production path (looser tolerance).
    params_bf16 = prepare_image_encoding_params(weight, bias, mxu_dtype=jnp.bfloat16)
    out_bf16 = jax.block_until_ready(image_encoding_forward(images, params_bf16))
    assert jnp.allclose(out_bf16, ref, atol=3e-2, rtol=3e-2), "bf16 mismatch"

    # --- non-aligned shape exercising padding, multi-step (M, N, K) grid and
    #     the multi-K accumulator path (explicit small tiles) ---
    B2, N2, D2 = 2, 20, 160          # 40 rows, K = D_out = 160 -> padded to 256
    k_i2, k_w2, k_b2 = jax.random.split(jax.random.PRNGKey(1), 3)
    images2 = jax.random.normal(k_i2, (B2, N2, D2), dtype=jnp.float32)
    weight2 = jax.random.normal(k_w2, (D2, D2), dtype=jnp.float32) * (1.0 / jnp.sqrt(D2))
    bias2 = jax.random.normal(k_b2, (D2,), dtype=jnp.float32) * 0.01
    ref2 = _reference(images2, weight2, bias2)

    params2 = prepare_image_encoding_params(weight2, bias2)
    out2 = jax.block_until_ready(
        image_encoding_forward(images2, params2, tiles=(16, 128, 128)))
    assert out2.shape == (B2, N2, D2)
    assert jnp.allclose(out2, ref2, atol=1e-4, rtol=1e-4), "multi-K tiled mismatch"

    # Same shape through the automatic per-generation tile selection
    # (weight fully VMEM-resident, single-K fast-path kernel).
    out2_auto = jax.block_until_ready(image_encoding_forward(images2, params2))
    assert jnp.allclose(out2_auto, ref2, atol=1e-4, rtol=1e-4), "auto-tile mismatch"

    print("KERNEL_OK")
</pallas_src>

<mosaic_0001>
module attributes {stable_mosaic.version = 11 : i64} {
  func.func @_proj_relu_single_k_kernel(%arg0: i32, %arg1: i32, %arg2: i32, %arg3: memref<16x128xf32, #tpu.memory_space<vmem>>, %arg4: memref<128x128xf32, #tpu.memory_space<vmem>>, %arg5: memref<1x128xf32, #tpu.memory_space<vmem>>, %arg6: memref<16x128xf32, #tpu.memory_space<vmem>>) attributes {dimension_semantics = [#tpu.dimension_semantics<parallel>, #tpu.dimension_semantics<parallel>, #tpu.dimension_semantics<arbitrary>], iteration_bounds = array<i64: 1, 1, 1>, scalar_prefetch = 0 : i64, scratch_operands = 0 : i64, tpu.core_type = #tpu.core_type<tc>, window_params = [{transform_indices = @transform_0, window_bounds = array<i64: 16, 128>}, {transform_indices = @transform_1, window_bounds = array<i64: 128, 128>}, {transform_indices = @transform_2, window_bounds = array<i64: 1, 128>}, {transform_indices = @transform_3, window_bounds = array<i64: 16, 128>}]} {
    %c0 = arith.constant 0 : index
    %c0_0 = arith.constant 0 : index
    %0 = vector.load %arg3[%c0, %c0_0] : memref<16x128xf32, #tpu.memory_space<vmem>>, vector<16x128xf32>
    %c0_1 = arith.constant 0 : index
    %c0_2 = arith.constant 0 : index
    %1 = vector.load %arg4[%c0_1, %c0_2] : memref<128x128xf32, #tpu.memory_space<vmem>>, vector<128x128xf32>
    %cst = arith.constant dense<0.000000e+00> : vector<16x128xf32>
    %2 = tpu.matmul %0, %1, %cst {dimension_numbers = #tpu.dot_dimension_numbers<[1], [0], [0], [1], [0, 0, 1, 1], [], []>} : vector<16x128xf32>, vector<128x128xf32>, vector<16x128xf32> -> vector<16x128xf32>
    %c0_3 = arith.constant 0 : index
    %c0_4 = arith.constant 0 : index
    %3 = vector.load %arg5[%c0_3, %c0_4] : memref<1x128xf32, #tpu.memory_space<vmem>>, vector<1x128xf32>
    %4 = vector.broadcast %3 : vector<1x128xf32> to vector<16x128xf32>
    %5 = arith.addf %2, %4 : vector<16x128xf32>
    %cst_5 = arith.constant 0.000000e+00 : f32
    %6 = vector.broadcast %cst_5 : f32 to vector<16x128xf32>
    %7 = arith.maximumf %5, %6 : vector<16x128xf32>
    %c0_6 = arith.constant 0 : index
    %c0_7 = arith.constant 0 : index
    %8 = vector.load %arg6[%c0_6, %c0_7] : memref<16x128xf32, #tpu.memory_space<vmem>>, vector<16x128xf32>
    tpu.vector_store %arg6[%c0_6, %c0_7], %7 {strides = array<i32>} : memref<16x128xf32, #tpu.memory_space<vmem>>, vector<16x128xf32>,
    return
  }
  func.func @transform_0(%arg0: i32, %arg1: i32, %arg2: i32) -> (i32, i32) {
    %c0_i32 = arith.constant 0 : i32
    return %arg0, %arg2 : i32, i32
  }
  func.func @transform_1(%arg0: i32, %arg1: i32, %arg2: i32) -> (i32, i32) {
    %c0_i32 = arith.constant 0 : i32
    return %arg2, %arg1 : i32, i32
  }
  func.func @transform_2(%arg0: i32, %arg1: i32, %arg2: i32) -> (i32, i32) {
    %c0_i32 = arith.constant 0 : i32
    %c0_i32_0 = arith.constant 0 : i32
    return %c0_i32, %arg1 : i32, i32
  }
  func.func @transform_3(%arg0: i32, %arg1: i32, %arg2: i32) -> (i32, i32) {
    %c0_i32 = arith.constant 0 : i32
    return %arg0, %arg1 : i32, i32
  }
}

</mosaic_0001>

<bundles_post_ra>
// kernel: tpu_custom_call.1
= control target key start
LH: loop header
LB: loop body
LE: loop exit
PB: predicated region body
PF: predicated region fallthrough
CT: control target
= control target key end

     0   :  { %8 = vsyncpa [#allocation3], 0  ;;  %s262_s0 = inlined_call_operand.hbm [shape: f32[16,128], index: 0, kind: input, shape index: {}]   ;;  %s263_s1 = inlined_call_operand.hbm [shape: f32[128,128], index: 1, kind: input, shape index: {}]   ;;  %s264_s2 = inlined_call_operand.vmem [shape: f32[1,128], index: 2, kind: input, shape index: {}]   ;;  %s265_s3 = inlined_call_operand.hbm [shape: f32[16,128], index: 3, kind: output, shape index: {}]  }
   0x1   :  { %9 = vsyncpa [#allocation6], 0 }
   0x2   :  { %10 = vsyncpa [#allocation4], 0  ;;  %s15_s14 = sshll.u32 %s262_s0, 4  ;;  %s216_s15 = smov [#allocation2]   ;;  %s16_s14 = int_to_ptr.hbm [resolvable:$true] %s15_s14 }
   0x3   :  { %s17_s16 = sshll.u32 %s216_s15, 4  ;;  %s28_s19 = sshll.u32 %s263_s1, 4  ;;  %s18_s16 = int_to_ptr.vmem [resolvable:$true] %s17_s16  ;;  %s29_s19 = int_to_ptr.hbm [resolvable:$true] %s28_s19 }
   0x4   :  { %s217_s20 = smov 128   ;;  %s218_s21 = smov 8  }
   0x5   :  { %23 = dma.hbm_to_vmem [thread:$0]  %s16_s14, 256, %s18_s16, [#allocation3], %s217_s20, %s217_s20, %s218_s21  }
   0x6   :  { %s219_s22 = smov [#allocation5]  }
   0x7   :  { %s30_s23 = sshll.u32 %s219_s22, 4  ;;  %s31_s23 = int_to_ptr.vmem [resolvable:$true] %s30_s23 }
   0x8   :  { %36 = dma.hbm_to_vmem [thread:$0]  %s29_s19, 2048, %s31_s23, [#allocation6], %s217_s20, %s217_s20, %s218_s21  }
   0x9   :  { %210 = dma.done.wait [#allocation3], 256  }
   0xa   :  { %211 = vsyncadd [#allocation3], 4294967040 }
   0xb   :  { %212 = dma.done.wait [#allocation6], 2048  }
   0xc   :  { %213 = vsyncadd [#allocation6], 4294965248  ;;  %v64_v0 = vld [vmem:[#allocation5 + $0x78] sm:$0xff]  ;;  %v63_v1 = vld [vmem:[#allocation5 + $0x70] sm:$0xff]  ;;  %s220_s24 = smov [#allocation7]   ;;  %s102_s28 = sshll.u32 %s265_s3, 4  ;;  %s103_s28 = int_to_ptr.hbm [resolvable:$true] %s102_s28 }
   0xd   :  { %69 = vmatpush.msra.mxu0 %v64_v0  ;;  %116 = vmatpush.msra.mxu1 %v64_v0  ;;  %v62_v2 = vld [vmem:[#allocation5 + $0x68] sm:$0xff]  ;;  %v61_v3 = vld [vmem:[#allocation5 + $0x60] sm:$0xff]  ;;  %v60_v4 = vld [vmem:[#allocation5 + $0x58] sm:$0xff]  ;;  %s100_s25 = sshll.u32 %s220_s24, 4  ;;  %s101_s25 = int_to_ptr.vmem [resolvable:$true] %s100_s25 }
   0xe   :  { %v59_v5 = vld [vmem:[#allocation5 + $0x50] sm:$0xff]  ;;  %v58_v6 = vld [vmem:[#allocation5 + $0x48] sm:$0xff]  ;;  %v57_v7 = vld [vmem:[#allocation5 + $0x40] sm:$0xff] }
   0xf   :  { %70 = vmatpush.msra.mxu0 %v63_v1  ;;  %117 = vmatpush.msra.mxu1 %v63_v1  ;;  %v56_v8 = vld [vmem:[#allocation5 + $0x38] sm:$0xff]  ;;  %v55_v9 = vld [vmem:[#allocation5 + $0x30] sm:$0xff]  ;;  %v54_v10 = vld [vmem:[#allocation5 + $0x28] sm:$0xff] }
  0x10   :  { %v53_v11 = vld [vmem:[#allocation5 + $0x20] sm:$0xff]  ;;  %v52_v12 = vld [vmem:[#allocation5 + $0x18] sm:$0xff]  ;;  %v51_v13 = vld [vmem:[#allocation5 + $0x10] sm:$0xff] }
  0x11   :  { %71 = vmatpush.msra.mxu0 %v62_v2  ;;  %118 = vmatpush.msra.mxu1 %v62_v2  ;;  %v50_v14 = vld [vmem:[#allocation5 + $0x8] sm:$0xff]  ;;  %v49_v15 = vld [vmem:[#allocation5] sm:$0xff]  ;;  %v47_v16 = vld [vmem:[#allocation2] sm:$0xff] }
  0x12   :  { %v48_v17 = vld [vmem:[#allocation2 + $0x8] sm:$0xff]  ;;  %v137_v18 = vld [vmem:[%s264_s2] ss:$0 sm:$0xff] }
  0x13   :  { %72 = vmatpush.msra.mxu0 %v61_v3  ;;  %119 = vmatpush.msra.mxu1 %v61_v3 }
  0x15   :  { %73 = vmatpush.msra.mxu0 %v60_v4  ;;  %120 = vmatpush.msra.mxu1 %v60_v4 }
  0x17   :  { %74 = vmatpush.msra.mxu0 %v59_v5  ;;  %121 = vmatpush.msra.mxu1 %v59_v5 }
  0x19   :  { %75 = vmatpush.msra.mxu0 %v58_v6  ;;  %122 = vmatpush.msra.mxu1 %v58_v6 }
  0x1b   :  { %76 = vmatpush.msra.mxu0 %v57_v7  ;;  %123 = vmatpush.msra.mxu1 %v57_v7 }
  0x1d   :  { %77 = vmatpush.msra.mxu0 %v56_v8  ;;  %124 = vmatpush.msra.mxu1 %v56_v8 }
  0x1f   :  { %78 = vmatpush.msra.mxu0 %v55_v9  ;;  %125 = vmatpush.msra.mxu1 %v55_v9 }
  0x21   :  { %79 = vmatpush.msra.mxu0 %v54_v10  ;;  %126 = vmatpush.msra.mxu1 %v54_v10 }
  0x23   :  { %80 = vmatpush.msra.mxu0 %v53_v11  ;;  %127 = vmatpush.msra.mxu1 %v53_v11 }
  0x25   :  { %81 = vmatpush.msra.mxu0 %v52_v12  ;;  %128 = vmatpush.msra.mxu1 %v52_v12 }
  0x27   :  { %82 = vmatpush.msra.mxu0 %v51_v13  ;;  %129 = vmatpush.msra.mxu1 %v51_v13 }
  0x29   :  { %83 = vmatpush.msra.mxu0 %v50_v14  ;;  %130 = vmatpush.msra.mxu1 %v50_v14 }
  0x2b   :  { %84 = vmatpush.msra.mxu0 %v49_v15  ;;  %131 = vmatpush.msra.mxu1 %v49_v15 }
  0x2c   :  { %85 = vmatmul.f32.vlgmr.msra.gmra.mxu0 %v47_v16  ;;  %88 = vmatmul.f32.vlgmr.msra.gmra.mxu1 %v48_v17 }
  0xa9   :  { %v86_v19 = vpop.f32.mrf.mxu0  ;;  %v89_v20 = vpop.f32.mrf.mxu1 }
  0xaa   :  { %v87_v21 = vadd.f32 %v137_v18, %v86_v19  ;;  %v90_v22 = vadd.f32 %v137_v18, %v89_v20 }
  0xac   :  { %v92_v23 = vmax.f32 %v87_v21, 0.0  ;;  %v93_v24 = vmax.f32 %v90_v22, 0.0 }
  0xae   :  { %94 = vst [vmem:[#allocation7] sm:$0xff] %v92_v23 }
  0xaf   :  { %95 = vst [vmem:[#allocation7 + $0x8] sm:$0xff] %v93_v24 }
  0xb0   :  { %108 = dma.vmem_to_hbm [thread:$0]  %s101_s25, 256, %s103_s28, [#allocation4], %s217_s20, %s217_s20, %s218_s21  }
  0xb1   :  { %214 = dma.done.wait [#allocation4], 256  }
  0xb2   :  { %215 = vsyncadd [#allocation4], 4294967040 }
  0xb3   :  { %113 = vsyncpa [#allocation3], 1 }
  0xb4   :  { %114 = vsyncpa [#allocation6], 1 }
  0xb5   :  { %115 = vsyncpa [#allocation4], 1 }

</bundles_post_ra>
